<compile_context>
chip_gen: v5e
topology: v5e:2x2
jax: 0.10.0
libtpu: 0.0.40
codegen_flags: <defaults>
</compile_context>

<pallas_src>
import functools

import jax
import jax.numpy as jnp
import numpy as np
from jax.experimental import pallas as pl
from jax.experimental.pallas import tpu as pltpu

_SUBLANE = 16   # bf16 sublane packing; tm is rounded to this
_LANE = 128     # lane quantum; 256 only pays off on v6e/v7x when G*in, G*out
                # approach 256 -- at this module's widths 128 (v5e MXU) is right


def _round_up(a, m):
    return (a + m - 1) // m * m


def _use_bf16_basis():
    """bf16 VPU path exists on v6e / v7x; keep the basis math in f32 elsewhere."""
    try:
        kind = jax.devices()[0].device_kind.lower()
    except Exception:
        return False
    return any(tag in kind for tag in ("v6", "v7", "tpu7"))


# ----------------------------------------------------------------------------
# Fused Pallas kernel: all ReLUKAN layers, one MXU GEMM per layer
# ----------------------------------------------------------------------------
def _relukan_kernel(basis_dtype, num_layers, z_ref, *refs):
    # z_ref              : (tm, K0) window-major basis source for layer 0
    # per layer (3 refs) : plo (1, K) f32, phi (1, K) f32, w (K, N) bf16
    #                      (r^2 and the bias row are folded into w)
    # refs[-1]           : output (tm, N_last) f32
    o_ref = refs[-1]
    layer_refs = refs[:3 * num_layers]

    z = z_ref[...]                                   # stays on-chip across layers
    for l in range(num_layers):
        plo_ref, phi_ref, w_ref = layer_refs[3 * l:3 * l + 3]
        zc = z.astype(basis_dtype)                   # one cast per layer
        plo = plo_ref[...].astype(basis_dtype)       # (1, K): sublane-broadcast
        phi = phi_ref[...].astype(basis_dtype)
        x1 = jnp.maximum(zc - plo, 0)                # VPU (bf16 on v6e/v7x)
        x2 = jnp.maximum(phi - zc, 0)
        bt = x1 * x2
        bt = bt * bt                                 # (x1*x2)^2 ; r^2 lives in w
        # Single GEMM per layer: K = merged windows + bias column; for hidden
        # layers N is pre-replicated so z is already the next layer's source.
        z = jnp.dot(bt.astype(jnp.bfloat16), w_ref[...],
                    preferred_element_type=jnp.float32)
    o_ref[...] = z.astype(o_ref.dtype)


# ----------------------------------------------------------------------------
# Forward wrapper: single pallas_call, batch-tiled grid
# ----------------------------------------------------------------------------
def _choose_tile(batch, block_b):
    """tm multiple of 16, as large as block_b allows, but >= 2 tiles whenever
    the batch permits (v7x: 2 TensorCores share the "parallel" axis) and sized
    so B_pad padding waste stays small (e.g. B=520 -> tm=272, not 512->1024)."""
    tm_cap = max(_SUBLANE, _round_up(min(block_b, batch), _SUBLANE))
    min_tiles = 2 if batch > _SUBLANE else 1
    n_tiles = max(min_tiles, -(-batch // tm_cap))
    tm = _round_up(-(-batch // n_tiles), _SUBLANE)
    b_pad = _round_up(batch, tm)
    return tm, b_pad


@functools.partial(
    jax.jit,
    static_argnames=("g", "k", "out_size", "block_b", "bf16_basis",
                     "single_buffer_consts"))
def relukan_forward(x, params, *, g, k, out_size, block_b=512,
                    bf16_basis=False, single_buffer_consts=True):
    """x: (B, width[0]) f32 -> (B, width[-1], 1), matching the PyTorch module."""
    B, in0 = x.shape
    G = g + k
    num_layers = len(params)
    K0 = params[0]["plo"].shape[1]
    N_last = params[-1]["w"].shape[1]
    assert K0 >= G * in0 + 1

    tm, B_pad = _choose_tile(B, block_b)
    basis_dtype = jnp.bfloat16 if bf16_basis else jnp.float32

    # Input slab: window-major merged layout z0[b, t*in0 + i] = x[b, i], padded
    # only to K0 = round_up(G*in0 + 1, 128) lanes (bias / pad columns are 0)
    # and to B_pad rows.  bf16 on v6e/v7x halves the input HBM traffic.
    z0 = jnp.tile(x.astype(basis_dtype), (1, G))
    z0 = jnp.pad(z0, ((0, B_pad - B), (0, K0 - G * in0)))

    use_buffered = single_buffer_consts and hasattr(pl, "Buffered")

    def const_spec(shape):
        # Grid-invariant operand (constant index_map): single VMEM buffer.
        if use_buffered:
            return pl.BlockSpec(shape, lambda i: (0,) * len(shape),
                                pipeline_mode=pl.Buffered(1))
        return pl.BlockSpec(shape, lambda i: (0,) * len(shape))

    in_specs = [pl.BlockSpec((tm, K0), lambda i: (i, 0))]
    inputs = [z0]
    const_bytes = 0
    max_k = K0
    for p in params:
        K = p["plo"].shape[1]
        N = p["w"].shape[1]
        max_k = max(max_k, K, N)
        in_specs += [const_spec((1, K)), const_spec((1, K)), const_spec((K, N))]
        inputs += [p["plo"], p["phi"], p["w"]]
        const_bytes += 4 * (p["plo"].size + p["phi"].size) + 2 * p["w"].size

    # VMEM budget from the actual slabs (assume worst-case double buffering of
    # the constants so the limit also covers the non-Buffered fallback path).
    vmem_bytes = 2 * const_bytes
    vmem_bytes += 2 * tm * K0 * z0.dtype.itemsize      # pipelined input tiles
    vmem_bytes += 2 * tm * N_last * 4                  # pipelined output tiles
    vmem_bytes += 8 * tm * max_k * 4                   # live temporaries / spill
    vmem_bytes = int(min(vmem_bytes + (16 << 20), 128 << 20))

    out = pl.pallas_call(
        functools.partial(_relukan_kernel, basis_dtype, num_layers),
        grid=(B_pad // tm,),
        in_specs=in_specs,
        out_specs=pl.BlockSpec((tm, N_last), lambda i: (i, 0)),
        out_shape=jax.ShapeDtypeStruct((B_pad, N_last), jnp.float32),
        compiler_params=pltpu.CompilerParams(
            dimension_semantics=("parallel",),         # v7x: shard tiles on 2 TCs
            vmem_limit_bytes=vmem_bytes),
    )(*inputs)

    return out[:B, :out_size, None]


# ----------------------------------------------------------------------------
# Parameter construction (PyTorch-equivalent raw params) + one-time packing
# ----------------------------------------------------------------------------
def init_relukan_params(width, g, k, key):
    params = []
    G = g + k
    for li in range(len(width) - 1):
        in_size, out_size = width[li], width[li + 1]
        phase_low = np.tile((np.arange(-k, g) / g)[None, :], (in_size, 1))
        phase_height = phase_low + (k + 1) / g
        key, kw, kb = jax.random.split(key, 3)
        fan_in = 1 * G * in_size                 # Conv2d(1, out, (G, in)) fan-in
        bound = 1.0 / np.sqrt(fan_in)
        conv_w = jax.random.uniform(kw, (out_size, 1, G, in_size),
                                    minval=-bound, maxval=bound,
                                    dtype=jnp.float32)
        conv_b = jax.random.uniform(kb, (out_size,),
                                    minval=-bound, maxval=bound,
                                    dtype=jnp.float32)
        params.append(dict(phase_low=jnp.asarray(phase_low, jnp.float32),
                           phase_height=jnp.asarray(phase_height, jnp.float32),
                           conv_w=conv_w, conv_b=conv_b))
    return params


def pack_relukan_params(raw_params, g, k):
    """One-time transform to the fused-kernel layout (done at init, not per call).

    Per layer l (input n, output m, G = g+k windows):
      * K = round_up(G*n + 1, 128): merged window-major basis width; column
        q = t*n + i carries input i under window t; column G*n is the bias
        column (its basis value is forced to 1 via plo=-1, phi=1 acting on a
        zero input); remaining columns are inert zero padding (plo = phi = 0).
      * w : (K, N) bf16.  Rows [0, G*n) hold r^2 * conv_w (PyTorch's raw
        reshape pairs basis[b, i, t] with conv_w.flat[o, i*G + t]); row G*n
        holds the bias.  Final layer: N = round_up(m, 128).  Hidden layers:
        the columns are replicated G times (column t'*m + o), so the GEMM
        output is already the NEXT layer's window-major basis source.
    TODO(synk): for very large g/k keep the last layer's weights in f32 if
    tighter accuracy is needed.
    """
    G = g + k
    r2 = float(4.0 * g * g / ((k + 1) * (k + 1))) ** 2   # basis is squared
    n_layers = len(raw_params)
    packed = []
    for li, p in enumerate(raw_params):
        conv_w = np.asarray(p["conv_w"], np.float32)     # (out, 1, G, in)
        conv_b = np.asarray(p["conv_b"], np.float32)     # (out,)
        out_size, _, _, in_size = conv_w.shape
        K = _round_up(G * in_size + 1, _LANE)
        last = (li == n_layers - 1)
        rep = 1 if last else G
        N = (_round_up(out_size, _LANE) if last
             else _round_up(G * out_size + 1, _LANE))

        # PyTorch reshapes the raw (B, in, G) basis buffer to (B, 1, G, in), so
        # the full-extent conv pairs basis[b, i, t] with conv_w.flat[o, i*G+t].
        w_perm = conv_w.reshape(out_size, in_size, G)    # [o, i, t]
        w_rows = np.transpose(w_perm, (2, 1, 0)).reshape(G * in_size, out_size)
        w_rows = w_rows * r2                             # fold r^2 into weights

        w_full = np.zeros((K, N), np.float32)
        for t in range(rep):
            c0 = t * out_size
            w_full[:G * in_size, c0:c0 + out_size] = w_rows
            w_full[G * in_size, c0:c0 + out_size] = conv_b   # bias row (no r^2)
        # Columns >= rep*out_size stay 0 -> the next layer's bias column sees a
        # zero input and its padding columns stay inert.

        plo = np.zeros((1, K), np.float32)
        phi = np.zeros((1, K), np.float32)
        plo[0, :G * in_size] = np.asarray(p["phase_low"]).T.reshape(-1)
        phi[0, :G * in_size] = np.asarray(p["phase_height"]).T.reshape(-1)
        plo[0, G * in_size] = -1.0    # bias column: basis(0) = (1*1)^2 = 1
        phi[0, G * in_size] = 1.0

        packed.append(dict(plo=jnp.asarray(plo), phi=jnp.asarray(phi),
                           w=jnp.asarray(w_full, jnp.bfloat16)))
    return packed


# ----------------------------------------------------------------------------
# Pure-JAX reference (mirrors the PyTorch ops step by step) for validation
# ----------------------------------------------------------------------------
def relukan_reference(x, raw_params, g, k):
    G = g + k
    r = 4.0 * g * g / ((k + 1) * (k + 1))
    h = x[:, :, None]                                # unsqueeze(-1)
    for p in raw_params:
        B, in_size = h.shape[0], h.shape[1]
        x1 = jnp.maximum(h - p["phase_low"][None], 0.0)
        x2 = jnp.maximum(p["phase_height"][None] - h, 0.0)
        bas = x1 * x2 * r
        bas = bas * bas
        X = bas.reshape(B, 1, G, in_size)            # raw reshape, as in torch
        y = jnp.einsum("bchw,ochw->bo", X, p["conv_w"],
                       precision=jax.lax.Precision.HIGHEST) + p["conv_b"]
        h = y[:, :, None]
    return h


if __name__ == "__main__":
    width = [4, 8, 3]
    g, k = 5, 3
    B = 4

    key = jax.random.PRNGKey(0)
    key, kx, kp = jax.random.split(key, 3)
    x = jax.random.normal(kx, (B, width[0]), dtype=jnp.float32)

    raw_params = init_relukan_params(width, g, k, kp)
    packed_params = pack_relukan_params(raw_params, g, k)
    bf16_basis = _use_bf16_basis()

    def run(single_buffer):
        y = relukan_forward(x, packed_params, g=g, k=k, out_size=width[-1],
                            bf16_basis=bf16_basis,
                            single_buffer_consts=single_buffer)
        return jax.block_until_ready(y)

    try:
        out = run(True)
    except Exception:
        # pipeline_mode=pl.Buffered(1) unsupported on this jax/libtpu build:
        # fall back to default double-buffered constants (results identical).
        out = run(False)

    ref = jax.block_until_ready(relukan_reference(x, raw_params, g, k))
    assert out.shape == (B, width[-1], 1), out.shape
    # bf16 MXU operands (+ bf16 basis math on v6e/v7x) with f32 accumulation.
    tol = 5e-2 if bf16_basis else 2e-2
    np.testing.assert_allclose(np.asarray(out), np.asarray(ref),
                               rtol=tol, atol=tol)
    print("KERNEL_OK")
</pallas_src>

<mosaic_0001>
module attributes {stable_mosaic.version = 11 : i64} {
  func.func @_relukan_kernel(%arg0: i32, %arg1: memref<16x128xf32, #tpu.memory_space<vmem>>, %arg2: memref<1x128xf32, #tpu.memory_space<vmem>>, %arg3: memref<1x128xf32, #tpu.memory_space<vmem>>, %arg4: memref<128x128xbf16, #tpu.memory_space<vmem>>, %arg5: memref<1x128xf32, #tpu.memory_space<vmem>>, %arg6: memref<1x128xf32, #tpu.memory_space<vmem>>, %arg7: memref<128x128xbf16, #tpu.memory_space<vmem>>, %arg8: memref<16x128xf32, #tpu.memory_space<vmem>>) attributes {dimension_semantics = [#tpu.dimension_semantics<parallel>], iteration_bounds = array<i64: 1>, scalar_prefetch = 0 : i64, scratch_operands = 0 : i64, tpu.core_type = #tpu.core_type<tc>, window_params = [{transform_indices = @transform_0, window_bounds = array<i64: 16, 128>}, {pipeline_mode = #tpu.pipeline_mode<synchronous>, transform_indices = @transform_1, window_bounds = array<i64: 1, 128>}, {pipeline_mode = #tpu.pipeline_mode<synchronous>, transform_indices = @transform_2, window_bounds = array<i64: 1, 128>}, {pipeline_mode = #tpu.pipeline_mode<synchronous>, transform_indices = @transform_3, window_bounds = array<i64: 128, 128>}, {pipeline_mode = #tpu.pipeline_mode<synchronous>, transform_indices = @transform_4, window_bounds = array<i64: 1, 128>}, {pipeline_mode = #tpu.pipeline_mode<synchronous>, transform_indices = @transform_5, window_bounds = array<i64: 1, 128>}, {pipeline_mode = #tpu.pipeline_mode<synchronous>, transform_indices = @transform_6, window_bounds = array<i64: 128, 128>}, {transform_indices = @transform_7, window_bounds = array<i64: 16, 128>}]} {
    %c0 = arith.constant 0 : index
    %c0_0 = arith.constant 0 : index
    %0 = vector.load %arg1[%c0, %c0_0] : memref<16x128xf32, #tpu.memory_space<vmem>>, vector<16x128xf32>
    %c0_1 = arith.constant 0 : index
    %c0_2 = arith.constant 0 : index
    %1 = vector.load %arg2[%c0_1, %c0_2] : memref<1x128xf32, #tpu.memory_space<vmem>>, vector<1x128xf32>
    %c0_3 = arith.constant 0 : index
    %c0_4 = arith.constant 0 : index
    %2 = vector.load %arg3[%c0_3, %c0_4] : memref<1x128xf32, #tpu.memory_space<vmem>>, vector<1x128xf32>
    %3 = vector.broadcast %1 : vector<1x128xf32> to vector<16x128xf32>
    %4 = arith.subf %0, %3 : vector<16x128xf32>
    %cst = arith.constant 0.000000e+00 : f32
    %5 = vector.broadcast %cst : f32 to vector<16x128xf32>
    %6 = arith.maximumf %4, %5 : vector<16x128xf32>
    %7 = vector.broadcast %2 : vector<1x128xf32> to vector<16x128xf32>
    %8 = arith.subf %7, %0 : vector<16x128xf32>
    %cst_5 = arith.constant 0.000000e+00 : f32
    %9 = vector.broadcast %cst_5 : f32 to vector<16x128xf32>
    %10 = arith.maximumf %8, %9 : vector<16x128xf32>
    %11 = arith.mulf %6, %10 : vector<16x128xf32>
    %12 = arith.mulf %11, %11 : vector<16x128xf32>
    %13 = arith.truncf %12 : vector<16x128xf32> to vector<16x128xbf16>
    %c0_6 = arith.constant 0 : index
    %c0_7 = arith.constant 0 : index
    %14 = vector.load %arg4[%c0_6, %c0_7] : memref<128x128xbf16, #tpu.memory_space<vmem>>, vector<128x128xbf16>
    %cst_8 = arith.constant dense<0.000000e+00> : vector<16x128xf32>
    %15 = tpu.matmul %13, %14, %cst_8 {dimension_numbers = #tpu.dot_dimension_numbers<[1], [0], [0], [1], [0, 0, 1, 1], [], []>} : vector<16x128xbf16>, vector<128x128xbf16>, vector<16x128xf32> -> vector<16x128xf32>
    %c0_9 = arith.constant 0 : index
    %c0_10 = arith.constant 0 : index
    %16 = vector.load %arg5[%c0_9, %c0_10] : memref<1x128xf32, #tpu.memory_space<vmem>>, vector<1x128xf32>
    %c0_11 = arith.constant 0 : index
    %c0_12 = arith.constant 0 : index
    %17 = vector.load %arg6[%c0_11, %c0_12] : memref<1x128xf32, #tpu.memory_space<vmem>>, vector<1x128xf32>
    %18 = vector.broadcast %16 : vector<1x128xf32> to vector<16x128xf32>
    %19 = arith.subf %15, %18 : vector<16x128xf32>
    %cst_13 = arith.constant 0.000000e+00 : f32
    %20 = vector.broadcast %cst_13 : f32 to vector<16x128xf32>
    %21 = arith.maximumf %19, %20 : vector<16x128xf32>
    %22 = vector.broadcast %17 : vector<1x128xf32> to vector<16x128xf32>
    %23 = arith.subf %22, %15 : vector<16x128xf32>
    %cst_14 = arith.constant 0.000000e+00 : f32
    %24 = vector.broadcast %cst_14 : f32 to vector<16x128xf32>
    %25 = arith.maximumf %23, %24 : vector<16x128xf32>
    %26 = arith.mulf %21, %25 : vector<16x128xf32>
    %27 = arith.mulf %26, %26 : vector<16x128xf32>
    %28 = arith.truncf %27 : vector<16x128xf32> to vector<16x128xbf16>
    %c0_15 = arith.constant 0 : index
    %c0_16 = arith.constant 0 : index
    %29 = vector.load %arg7[%c0_15, %c0_16] : memref<128x128xbf16, #tpu.memory_space<vmem>>, vector<128x128xbf16>
    %cst_17 = arith.constant dense<0.000000e+00> : vector<16x128xf32>
    %30 = tpu.matmul %28, %29, %cst_17 {dimension_numbers = #tpu.dot_dimension_numbers<[1], [0], [0], [1], [0, 0, 1, 1], [], []>} : vector<16x128xbf16>, vector<128x128xbf16>, vector<16x128xf32> -> vector<16x128xf32>
    %c0_18 = arith.constant 0 : index
    %c0_19 = arith.constant 0 : index
    %31 = vector.load %arg8[%c0_18, %c0_19] : memref<16x128xf32, #tpu.memory_space<vmem>>, vector<16x128xf32>
    tpu.vector_store %arg8[%c0_18, %c0_19], %30 {strides = array<i32>} : memref<16x128xf32, #tpu.memory_space<vmem>>, vector<16x128xf32>,
    return
  }
  func.func @transform_0(%arg0: i32) -> (i32, i32) {
    %c0_i32 = arith.constant 0 : i32
    %c0_i32_0 = arith.constant 0 : i32
    return %arg0, %c0_i32 : i32, i32
  }
  func.func @transform_1(%arg0: i32) -> (i32, i32) {
    %c0_i32 = arith.constant 0 : i32
    %c0_i32_0 = arith.constant 0 : i32
    %c0_i32_1 = arith.constant 0 : i32
    return %c0_i32, %c0_i32_0 : i32, i32
  }
  func.func @transform_2(%arg0: i32) -> (i32, i32) {
    %c0_i32 = arith.constant 0 : i32
    %c0_i32_0 = arith.constant 0 : i32
    %c0_i32_1 = arith.constant 0 : i32
    return %c0_i32, %c0_i32_0 : i32, i32
  }
  func.func @transform_3(%arg0: i32) -> (i32, i32) {
    %c0_i32 = arith.constant 0 : i32
    %c0_i32_0 = arith.constant 0 : i32
    %c0_i32_1 = arith.constant 0 : i32
    return %c0_i32, %c0_i32_0 : i32, i32
  }
  func.func @transform_4(%arg0: i32) -> (i32, i32) {
    %c0_i32 = arith.constant 0 : i32
    %c0_i32_0 = arith.constant 0 : i32
    %c0_i32_1 = arith.constant 0 : i32
    return %c0_i32, %c0_i32_0 : i32, i32
  }
  func.func @transform_5(%arg0: i32) -> (i32, i32) {
    %c0_i32 = arith.constant 0 : i32
    %c0_i32_0 = arith.constant 0 : i32
    %c0_i32_1 = arith.constant 0 : i32
    return %c0_i32, %c0_i32_0 : i32, i32
  }
  func.func @transform_6(%arg0: i32) -> (i32, i32) {
    %c0_i32 = arith.constant 0 : i32
    %c0_i32_0 = arith.constant 0 : i32
    %c0_i32_1 = arith.constant 0 : i32
    return %c0_i32, %c0_i32_0 : i32, i32
  }
  func.func @transform_7(%arg0: i32) -> (i32, i32) {
    %c0_i32 = arith.constant 0 : i32
    %c0_i32_0 = arith.constant 0 : i32
    return %arg0, %c0_i32 : i32, i32
  }
}

module attributes {stable_mosaic.version = 11 : i64} {
  func.func @_relukan_kernel(%arg0: i32, %arg1: memref<16x128xf32, #tpu.memory_space<vmem>>, %arg2: memref<1x128xf32, #tpu.memory_space<vmem>>, %arg3: memref<1x128xf32, #tpu.memory_space<vmem>>, %arg4: memref<128x128xbf16, #tpu.memory_space<vmem>>, %arg5: memref<1x128xf32, #tpu.memory_space<vmem>>, %arg6: memref<1x128xf32, #tpu.memory_space<vmem>>, %arg7: memref<128x128xbf16, #tpu.memory_space<vmem>>, %arg8: memref<16x128xf32, #tpu.memory_space<vmem>>) attributes {dimension_semantics = [#tpu.dimension_semantics<parallel>], iteration_bounds = array<i64: 1>, scalar_prefetch = 0 : i64, scratch_operands = 0 : i64, tpu.core_type = #tpu.core_type<tc>, window_params = [{transform_indices = @transform_0, window_bounds = array<i64: 16, 128>}, {pipeline_mode = #tpu.pipeline_mode<synchronous>, transform_indices = @transform_1, window_bounds = array<i64: 1, 128>}, {pipeline_mode = #tpu.pipeline_mode<synchronous>, transform_indices = @transform_2, window_bounds = array<i64: 1, 128>}, {pipeline_mode = #tpu.pipeline_mode<synchronous>, transform_indices = @transform_3, window_bounds = array<i64: 128, 128>}, {pipeline_mode = #tpu.pipeline_mode<synchronous>, transform_indices = @transform_4, window_bounds = array<i64: 1, 128>}, {pipeline_mode = #tpu.pipeline_mode<synchronous>, transform_indices = @transform_5, window_bounds = array<i64: 1, 128>}, {pipeline_mode = #tpu.pipeline_mode<synchronous>, transform_indices = @transform_6, window_bounds = array<i64: 128, 128>}, {transform_indices = @transform_7, window_bounds = array<i64: 16, 128>}]} {
    %c0 = arith.constant 0 : index
    %c0_0 = arith.constant 0 : index
    %0 = vector.load %arg1[%c0, %c0_0] : memref<16x128xf32, #tpu.memory_space<vmem>>, vector<16x128xf32>
    %c0_1 = arith.constant 0 : index
    %c0_2 = arith.constant 0 : index
    %1 = vector.load %arg2[%c0_1, %c0_2] : memref<1x128xf32, #tpu.memory_space<vmem>>, vector<1x128xf32>
    %c0_3 = arith.constant 0 : index
    %c0_4 = arith.constant 0 : index
    %2 = vector.load %arg3[%c0_3, %c0_4] : memref<1x128xf32, #tpu.memory_space<vmem>>, vector<1x128xf32>
    %3 = vector.broadcast %1 : vector<1x128xf32> to vector<16x128xf32>
    %4 = arith.subf %0, %3 : vector<16x128xf32>
    %cst = arith.constant 0.000000e+00 : f32
    %5 = vector.broadcast %cst : f32 to vector<16x128xf32>
    %6 = arith.maximumf %4, %5 : vector<16x128xf32>
    %7 = vector.broadcast %2 : vector<1x128xf32> to vector<16x128xf32>
    %8 = arith.subf %7, %0 : vector<16x128xf32>
    %cst_5 = arith.constant 0.000000e+00 : f32
    %9 = vector.broadcast %cst_5 : f32 to vector<16x128xf32>
    %10 = arith.maximumf %8, %9 : vector<16x128xf32>
    %11 = arith.mulf %6, %10 : vector<16x128xf32>
    %12 = arith.mulf %11, %11 : vector<16x128xf32>
    %13 = arith.truncf %12 : vector<16x128xf32> to vector<16x128xbf16>
    %c0_6 = arith.constant 0 : index
    %c0_7 = arith.constant 0 : index
    %14 = vector.load %arg4[%c0_6, %c0_7] : memref<128x128xbf16, #tpu.memory_space<vmem>>, vector<128x128xbf16>
    %cst_8 = arith.constant dense<0.000000e+00> : vector<16x128xf32>
    %15 = tpu.matmul %13, %14, %cst_8 {dimension_numbers = #tpu.dot_dimension_numbers<[1], [0], [0], [1], [0, 0, 1, 1], [], []>} : vector<16x128xbf16>, vector<128x128xbf16>, vector<16x128xf32> -> vector<16x128xf32>
    %c0_9 = arith.constant 0 : index
    %c0_10 = arith.constant 0 : index
    %16 = vector.load %arg5[%c0_9, %c0_10] : memref<1x128xf32, #tpu.memory_space<vmem>>, vector<1x128xf32>
    %c0_11 = arith.constant 0 : index
    %c0_12 = arith.constant 0 : index
    %17 = vector.load %arg6[%c0_11, %c0_12] : memref<1x128xf32, #tpu.memory_space<vmem>>, vector<1x128xf32>
    %18 = vector.broadcast %16 : vector<1x128xf32> to vector<16x128xf32>
    %19 = arith.subf %15, %18 : vector<16x128xf32>
    %cst_13 = arith.constant 0.000000e+00 : f32
    %20 = vector.broadcast %cst_13 : f32 to vector<16x128xf32>
    %21 = arith.maximumf %19, %20 : vector<16x128xf32>
    %22 = vector.broadcast %17 : vector<1x128xf32> to vector<16x128xf32>
    %23 = arith.subf %22, %15 : vector<16x128xf32>
    %cst_14 = arith.constant 0.000000e+00 : f32
    %24 = vector.broadcast %cst_14 : f32 to vector<16x128xf32>
    %25 = arith.maximumf %23, %24 : vector<16x128xf32>
    %26 = arith.mulf %21, %25 : vector<16x128xf32>
    %27 = arith.mulf %26, %26 : vector<16x128xf32>
    %28 = arith.truncf %27 : vector<16x128xf32> to vector<16x128xbf16>
    %c0_15 = arith.constant 0 : index
    %c0_16 = arith.constant 0 : index
    %29 = vector.load %arg7[%c0_15, %c0_16] : memref<128x128xbf16, #tpu.memory_space<vmem>>, vector<128x128xbf16>
    %cst_17 = arith.constant dense<0.000000e+00> : vector<16x128xf32>
    %30 = tpu.matmul %28, %29, %cst_17 {dimension_numbers = #tpu.dot_dimension_numbers<[1], [0], [0], [1], [0, 0, 1, 1], [], []>} : vector<16x128xbf16>, vector<128x128xbf16>, vector<16x128xf32> -> vector<16x128xf32>
    %c0_18 = arith.constant 0 : index
    %c0_19 = arith.constant 0 : index
    %31 = vector.load %arg8[%c0_18, %c0_19] : memref<16x128xf32, #tpu.memory_space<vmem>>, vector<16x128xf32>
    tpu.vector_store %arg8[%c0_18, %c0_19], %30 {strides = array<i32>} : memref<16x128xf32, #tpu.memory_space<vmem>>, vector<16x128xf32>,
    return
  }
  func.func @transform_0(%arg0: i32) -> (i32, i32) {
    %c0_i32 = arith.constant 0 : i32
    %c0_i32_0 = arith.constant 0 : i32
    return %arg0, %c0_i32 : i32, i32
  }
  func.func @transform_1(%arg0: i32) -> (i32, i32) {
    %c0_i32 = arith.constant 0 : i32
    %c0_i32_0 = arith.constant 0 : i32
    %c0_i32_1 = arith.constant 0 : i32
    return %c0_i32, %c0_i32_0 : i32, i32
  }
  func.func @transform_2(%arg0: i32) -> (i32, i32) {
    %c0_i32 = arith.constant 0 : i32
    %c0_i32_0 = arith.constant 0 : i32
    %c0_i32_1 = arith.constant 0 : i32
    return %c0_i32, %c0_i32_0 : i32, i32
  }
  func.func @transform_3(%arg0: i32) -> (i32, i32) {
    %c0_i32 = arith.constant 0 : i32
    %c0_i32_0 = arith.constant 0 : i32
    %c0_i32_1 = arith.constant 0 : i32
    return %c0_i32, %c0_i32_0 : i32, i32
  }
  func.func @transform_4(%arg0: i32) -> (i32, i32) {
    %c0_i32 = arith.constant 0 : i32
    %c0_i32_0 = arith.constant 0 : i32
    %c0_i32_1 = arith.constant 0 : i32
    return %c0_i32, %c0_i32_0 : i32, i32
  }
  func.func @transform_5(%arg0: i32) -> (i32, i32) {
    %c0_i32 = arith.constant 0 : i32
    %c0_i32_0 = arith.constant 0 : i32
    %c0_i32_1 = arith.constant 0 : i32
    return %c0_i32, %c0_i32_0 : i32, i32
  }
  func.func @transform_6(%arg0: i32) -> (i32, i32) {
    %c0_i32 = arith.constant 0 : i32
    %c0_i32_0 = arith.constant 0 : i32
    %c0_i32_1 = arith.constant 0 : i32
    return %c0_i32, %c0_i32_0 : i32, i32
  }
  func.func @transform_7(%arg0: i32) -> (i32, i32) {
    %c0_i32 = arith.constant 0 : i32
    %c0_i32_0 = arith.constant 0 : i32
    return %arg0, %c0_i32 : i32, i32
  }
}

</mosaic_0001>

<bundles_post_ra>
// kernel: tile.9
= control target key start
LH: loop header
LB: loop body
LE: loop exit
PB: predicated region body
PF: predicated region fallthrough
CT: control target
= control target key end

     0   :  { %s67_s8 = smov 28   ;;  %s68_s11 = smov 20   ;;  %vm3_vm0 = vcmask 31744   ;;  %vm9_vm1 = vcmask 261344   ;;  %vm15_vm2 = vcmask 228544   ;;  %vm21_vm3 = vcmask 195744   ;;  %s111_s0 = inlined_call_operand.vmem [shape: f32[4,8,4], index: 0, kind: input, shape index: {}]   ;;  %s112_s1 = inlined_call_operand.vmem [shape: f32[4,32], index: 1, kind: output, shape index: {}]  }
   0x1   :  { %v53_v0 = vld [vmem:[%s111_s0 + $0x7] ss:$8 sm:$0xf]   ;;  %v55_v1 = vld [vmem:[%s111_s0 + $0x5] ss:$8 sm:$0xf]  }
   0x2   :  { %7 = vrot.lane.b32.xlu0 %v53_v0, %s67_s8  ;;  %19 = vrot.lane.b32.xlu1 %v55_v1, %s68_s11  ;;  %v57_v2 = vld [vmem:[%s111_s0 + $0x3] ss:$8 sm:$0xf]   ;;  %s69_s14 = smov 12   ;;  %s70_s19 = smov 24   ;;  %vm27_vm4 = vcmask 162944  }
   0x3   :  { %31 = vrot.lane.b32.xlu2 %v57_v2, %s69_s14  ;;  %v54_v3 = vld [vmem:[%s111_s0 + $0x6] ss:$8 sm:$0xf]   ;;  %v56_v4 = vld [vmem:[%s111_s0 + $0x4] ss:$8 sm:$0xf]  }
   0x4   :  { %s71_s20 = smov 16   ;;  %v58_v5 = vld [vmem:[%s111_s0 + $0x2] ss:$8 sm:$0xf]   ;;  %s72_s23 = smov 8   ;;  %vm33_vm5 = vcmask 130144  }
   0x5   :  { %v59_v6 = vld [vmem:[%s111_s0 + $0x1] ss:$8 sm:$0xf]   ;;  %s73_s26 = smov 4   ;;  %vm39_vm6 = vcmask 97344   ;;  %vm45_vm7 = vcmask 64544  }
   0x6   :  { %v2_v7 = vld [vmem:[%s111_s0] ss:$8 sm:$0xf]  }
   0x7   :  { %4 = vst.msk [vmem:[#allocation0] sm:$0xf] %vm3_vm0, %v2_v7  }
   0xa   :  { %13 = vrot.lane.b32.xlu0 %v54_v3, %s70_s19  ;;  %25 = vrot.lane.b32.xlu1 %v56_v4, %s71_s20 }
   0xb   :  { %37 = vrot.lane.b32.xlu2 %v58_v5, %s72_s23 }
  0x12   :  { %43 = vrot.lane.b32.xlu0 %v59_v6, %s73_s26 }
  0x5d   :  { %v32_v8 = vpop.permute.xlu2 %31  }
  0x65   :  { %v38_v9 = vpop.permute.xlu2 %37  }
  0x74   :  { %v8_v10 = vpop.permute.xlu0 %7   ;;  %v20_v11 = vpop.permute.xlu1 %19  }
  0x75   :  { %10 = vst.msk [vmem:[#allocation0] sm:$0xf] %vm9_vm1, %v8_v10  }
  0x7c   :  { %v14_v12 = vpop.permute.xlu0 %13   ;;  %v26_v13 = vpop.permute.xlu1 %25  }
  0x7d   :  { %16 = vst.msk [vmem:[#allocation0] sm:$0xf] %vm15_vm2, %v14_v12  }
  0x7e   :  { %22 = vst.msk [vmem:[#allocation0] sm:$0xf] %vm21_vm3, %v20_v11  }
  0x7f   :  { %28 = vst.msk [vmem:[#allocation0] sm:$0xf] %vm27_vm4, %v26_v13  }
  0x80   :  { %34 = vst.msk [vmem:[#allocation0] sm:$0xf] %vm33_vm5, %v32_v8  }
  0x81   :  { %40 = vst.msk [vmem:[#allocation0] sm:$0xf] %vm39_vm6, %v38_v9  }
  0x84   :  { %v44_v14 = vpop.permute.xlu0 %43  }
  0x85   :  { %46 = vst.msk [vmem:[#allocation0] sm:$0xf] %vm45_vm7, %v44_v14  }
  0x8c   :  { %v49_v15 = vld [vmem:[#allocation0] sm:$0xf] }
  0x8d   :  { %52 = vst [vmem:[%s112_s1] sm:$0xf] %v49_v15 }

// kernel: relukan_forward.1
= control target key start
LH: loop header
LB: loop body
LE: loop exit
PB: predicated region body
PF: predicated region fallthrough
CT: control target
= control target key end

     0   :  { %12 = vsyncpa [#allocation3], 0  ;;  %s362_s27 = smov [#allocation2]   ;;  %s363_s29 = smov 64   ;;  %s456_s0 = inlined_call_operand.vmem [shape: f32[16,128], index: 0, kind: input, shape index: {}]   ;;  %s457_s1 = inlined_call_operand.vmem [shape: f32[1,128], index: 1, kind: input, shape index: {}]   ;;  %s458_s2 = inlined_call_operand.vmem [shape: f32[1,128], index: 2, kind: input, shape index: {}]   ;;  %s459_s3 = inlined_call_operand.vmem [shape: bf16[128,128], index: 3, kind: input, shape index: {}]   ;;  %s460_s4 = inlined_call_operand.vmem [shape: f32[1,128], index: 4, kind: input, shape index: {}]   ;;  %s461_s5 = inlined_call_operand.vmem [shape: f32[1,128], index: 5, kind: input, shape index: {}]   ;;  %s462_s6 = inlined_call_operand.hbm [shape: bf16[128,128], index: 6, kind: input, shape index: {}]   ;;  %s463_s7 = inlined_call_operand.vmem [shape: f32[16,128], index: 7, kind: output, shape index: {}]  }
   0x1   :  { %s29_s26 = sshll.u32 %s462_s6, 4  ;;  %s31_s28 = sshll.u32 %s362_s27, 4  ;;  %s30_s26 = int_to_ptr.hbm [resolvable:$true] %s29_s26  ;;  %s32_s28 = int_to_ptr.vmem [resolvable:$true] %s31_s28 }
   0x2   :  { %s364_s30 = smov 4  }
   0x3   :  { %37 = dma.hbm_to_vmem [thread:$0]  %s30_s26, 1024, %s32_s28, [#allocation3], %s363_s29, %s363_s29, %s364_s30  }
   0x4   :  { %360 = dma.done.wait [#allocation3], 1024  }
   0x5   :  { %361 = vsyncadd [#allocation3], 4294966272  ;;  %v320_v0 = vld [vmem:[%s459_s3 + $0x38] sm:$0xff]  ;;  %v319_v1 = vld [vmem:[%s459_s3 + $0x30] sm:$0xff] }
   0x6   :  { %129 = vmatpush.bf16.msra.mxu0 %v320_v0  ;;  %v328_v2 = vld [vmem:[#allocation2 + $0x38] sm:$0xff]  ;;  %v318_v3 = vld [vmem:[%s459_s3 + $0x28] sm:$0xff]  ;;  %v327_v4 = vld [vmem:[#allocation2 + $0x30] sm:$0xff] }
   0x7   :  { %228 = vmatpush.bf16.msra.mxu1 %v328_v2  ;;  %v332_v5 = vld [vmem:[%s457_s1] ss:$0 sm:$0xff]  ;;  %v43_v9 = vld [vmem:[%s456_s0 + $0x8] sm:$0xff]  ;;  %v316_v15 = vld [vmem:[%s459_s3 + $0x18] sm:$0xff] }
   0x8   :  { %v333_v6 = vld [vmem:[%s458_s2] ss:$0 sm:$0xff]  ;;  %v326_v10 = vld [vmem:[#allocation2 + $0x28] sm:$0xff]  ;;  %v50_v12 = vsub.f32 %v43_v9, %v332_v5  ;;  %v315_v20 = vld [vmem:[%s459_s3 + $0x10] sm:$0xff] }
   0x9   :  { %v317_v7 = vld [vmem:[%s459_s3 + $0x20] sm:$0xff]  ;;  %v57_v14 = vsub.f32 %v333_v6, %v43_v9  ;;  %v314_v23 = vld [vmem:[%s459_s3 + $0x8] sm:$0xff]  ;;  %v324_v29 = vld [vmem:[#allocation2 + $0x18] sm:$0xff] }
   0xa   :  { %130 = vmatpush.bf16.msra.mxu0 %v319_v1  ;;  %v42_v8 = vld [vmem:[%s456_s0] sm:$0xff]  ;;  %v52_v17 = vmax.f32 %v50_v12, 0.0  ;;  %v323_v30 = vld [vmem:[#allocation2 + $0x10] sm:$0xff]  ;;  %v322_v31 = vld [vmem:[#allocation2 + $0x8] sm:$0xff] }
   0xb   :  { %229 = vmatpush.bf16.msra.mxu1 %v327_v4  ;;  %v49_v11 = vsub.f32 %v42_v8, %v332_v5  ;;  %v56_v13 = vsub.f32 %v333_v6, %v42_v8  ;;  %v59_v19 = vmax.f32 %v57_v14, 0.0  ;;  %v313_v26 = vld [vmem:[%s459_s3] sm:$0xff] }
   0xc   :  { %v325_v28 = vld [vmem:[#allocation2 + $0x20] sm:$0xff] }
   0xd   :  { %v51_v16 = vmax.f32 %v49_v11, 0.0  ;;  %v58_v18 = vmax.f32 %v56_v13, 0.0  ;;  %v61_v22 = vmul.f32 %v59_v19, %v52_v17  ;;  %v321_v32 = vld [vmem:[#allocation2] sm:$0xff] }
   0xe   :  { %131 = vmatpush.bf16.msra.mxu0 %v318_v3  ;;  %v334_v33 = vld [vmem:[%s460_s4] ss:$0 sm:$0xff] }
   0xf   :  { %230 = vmatpush.bf16.msra.mxu1 %v326_v10  ;;  %v60_v21 = vmul.f32 %v58_v18, %v51_v16  ;;  %v63_v25 = vmul.f32 %v61_v22, %v61_v22  ;;  %v335_v34 = vld [vmem:[%s461_s5] ss:$0 sm:$0xff] }
  0x11   :  { %v62_v24 = vmul.f32 %v60_v21, %v60_v21 }
  0x12   :  { %132 = vmatpush.bf16.msra.mxu0 %v317_v7 }
  0x13   :  { %v64_v27 = vpack.c.bf16 %v63_v25, %v62_v24  ;;  %231 = vmatpush.bf16.msra.mxu1 %v325_v28 }
  0x16   :  { %133 = vmatpush.bf16.msra.mxu0 %v316_v15 }
  0x17   :  { %232 = vmatpush.bf16.msra.mxu1 %v324_v29 }
  0x1a   :  { %134 = vmatpush.bf16.msra.mxu0 %v315_v20 }
  0x1b   :  { %233 = vmatpush.bf16.msra.mxu1 %v323_v30 }
  0x1e   :  { %135 = vmatpush.bf16.msra.mxu0 %v314_v23 }
  0x1f   :  { %234 = vmatpush.bf16.msra.mxu1 %v322_v31 }
  0x22   :  { %136 = vmatpush.bf16.msra.mxu0 %v313_v26 }
  0x23   :  { %235 = vmatpush.bf16.msra.mxu1 %v321_v32 }
  0x25   :  { %137 = vmatmul.bf16.vlgmr.msra.gmra.mxu0 %v64_v27 }
  0xa2   :  { %v138_v35 = vpop.f32.mrf.mxu0 }
  0xa3   :  { %v148_v36 = vsub.f32 %v138_v35, %v334_v33  ;;  %v155_v37 = vsub.f32 %v335_v34, %v138_v35 }
  0xa5   :  { %v150_v38 = vmax.f32 %v148_v36, 0.0  ;;  %v157_v39 = vmax.f32 %v155_v37, 0.0 }
  0xa7   :  { %v159_v45 = vmul.f32 %v157_v39, %v150_v38 }
  0xa9   :  { %v161_v47 = vmul.f32 %v159_v45, %v159_v45 }
  0xaa   :  { %v140_v40 = vpop.f32.mrf.mxu0 }
  0xab   :  { %v149_v41 = vsub.f32 %v140_v40, %v334_v33  ;;  %v156_v42 = vsub.f32 %v335_v34, %v140_v40 }
  0xad   :  { %v151_v43 = vmax.f32 %v149_v41, 0.0  ;;  %v158_v44 = vmax.f32 %v156_v42, 0.0 }
  0xaf   :  { %v160_v46 = vmul.f32 %v158_v44, %v151_v43 }
  0xb1   :  { %v162_v48 = vmul.f32 %v160_v46, %v160_v46 }
  0xb3   :  { %v163_v49 = vpack.c.bf16 %v162_v48, %v161_v47 }
  0xb5   :  { %236 = vmatmul.bf16.vlgmr.msra.gmra.mxu1 %v163_v49 }
 0x132   :  { %v237_v50 = vpop.f32.mrf.mxu1 }
 0x133   :  { %242 = vst [vmem:[%s463_s7] sm:$0xff] %v237_v50 }
 0x13a   :  { %v239_v51 = vpop.f32.mrf.mxu1 }
 0x13b   :  { %243 = vst [vmem:[%s463_s7 + $0x8] sm:$0xff] %v239_v51 }
 0x13c   :  { %248 = vsyncpa [#allocation3], 1 }

// kernel: tile.9
= control target key start
LH: loop header
LB: loop body
LE: loop exit
PB: predicated region body
PF: predicated region fallthrough
CT: control target
= control target key end

     0   :  { %s67_s8 = smov 28   ;;  %s68_s11 = smov 20   ;;  %vm3_vm0 = vcmask 31744   ;;  %vm9_vm1 = vcmask 261344   ;;  %vm15_vm2 = vcmask 228544   ;;  %vm21_vm3 = vcmask 195744   ;;  %s111_s0 = inlined_call_operand.vmem [shape: f32[4,8,4], index: 0, kind: input, shape index: {}]   ;;  %s112_s1 = inlined_call_operand.vmem [shape: f32[4,32], index: 1, kind: output, shape index: {}]  }
   0x1   :  { %v53_v0 = vld [vmem:[%s111_s0 + $0x7] ss:$8 sm:$0xf]   ;;  %v55_v1 = vld [vmem:[%s111_s0 + $0x5] ss:$8 sm:$0xf]  }
   0x2   :  { %7 = vrot.lane.b32.xlu0 %v53_v0, %s67_s8  ;;  %19 = vrot.lane.b32.xlu1 %v55_v1, %s68_s11  ;;  %v57_v2 = vld [vmem:[%s111_s0 + $0x3] ss:$8 sm:$0xf]   ;;  %s69_s14 = smov 12   ;;  %s70_s19 = smov 24   ;;  %vm27_vm4 = vcmask 162944  }
   0x3   :  { %31 = vrot.lane.b32.xlu2 %v57_v2, %s69_s14  ;;  %v54_v3 = vld [vmem:[%s111_s0 + $0x6] ss:$8 sm:$0xf]   ;;  %v56_v4 = vld [vmem:[%s111_s0 + $0x4] ss:$8 sm:$0xf]  }
   0x4   :  { %s71_s20 = smov 16   ;;  %v58_v5 = vld [vmem:[%s111_s0 + $0x2] ss:$8 sm:$0xf]   ;;  %s72_s23 = smov 8   ;;  %vm33_vm5 = vcmask 130144  }
   0x5   :  { %v59_v6 = vld [vmem:[%s111_s0 + $0x1] ss:$8 sm:$0xf]   ;;  %s73_s26 = smov 4   ;;  %vm39_vm6 = vcmask 97344   ;;  %vm45_vm7 = vcmask 64544  }
   0x6   :  { %v2_v7 = vld [vmem:[%s111_s0] ss:$8 sm:$0xf]  }
   0x7   :  { %4 = vst.msk [vmem:[#allocation0] sm:$0xf] %vm3_vm0, %v2_v7  }
   0xa   :  { %13 = vrot.lane.b32.xlu0 %v54_v3, %s70_s19  ;;  %25 = vrot.lane.b32.xlu1 %v56_v4, %s71_s20 }
   0xb   :  { %37 = vrot.lane.b32.xlu2 %v58_v5, %s72_s23 }
  0x12   :  { %43 = vrot.lane.b32.xlu0 %v59_v6, %s73_s26 }
  0x5d   :  { %v32_v8 = vpop.permute.xlu2 %31  }
  0x65   :  { %v38_v9 = vpop.permute.xlu2 %37  }
  0x74   :  { %v8_v10 = vpop.permute.xlu0 %7   ;;  %v20_v11 = vpop.permute.xlu1 %19  }
  0x75   :  { %10 = vst.msk [vmem:[#allocation0] sm:$0xf] %vm9_vm1, %v8_v10  }
  0x7c   :  { %v14_v12 = vpop.permute.xlu0 %13   ;;  %v26_v13 = vpop.permute.xlu1 %25  }
  0x7d   :  { %16 = vst.msk [vmem:[#allocation0] sm:$0xf] %vm15_vm2, %v14_v12  }
  0x7e   :  { %22 = vst.msk [vmem:[#allocation0] sm:$0xf] %vm21_vm3, %v20_v11  }
  0x7f   :  { %28 = vst.msk [vmem:[#allocation0] sm:$0xf] %vm27_vm4, %v26_v13  }
  0x80   :  { %34 = vst.msk [vmem:[#allocation0] sm:$0xf] %vm33_vm5, %v32_v8  }
  0x81   :  { %40 = vst.msk [vmem:[#allocation0] sm:$0xf] %vm39_vm6, %v38_v9  }
  0x84   :  { %v44_v14 = vpop.permute.xlu0 %43  }
  0x85   :  { %46 = vst.msk [vmem:[#allocation0] sm:$0xf] %vm45_vm7, %v44_v14  }
  0x8c   :  { %v49_v15 = vld [vmem:[#allocation0] sm:$0xf] }
  0x8d   :  { %52 = vst [vmem:[%s112_s1] sm:$0xf] %v49_v15 }

// kernel: relukan_forward.1
= control target key start
LH: loop header
LB: loop body
LE: loop exit
PB: predicated region body
PF: predicated region fallthrough
CT: control target
= control target key end

     0   :  { %12 = vsyncpa [#allocation3], 0  ;;  %s362_s27 = smov [#allocation2]   ;;  %s363_s29 = smov 64   ;;  %s456_s0 = inlined_call_operand.vmem [shape: f32[16,128], index: 0, kind: input, shape index: {}]   ;;  %s457_s1 = inlined_call_operand.vmem [shape: f32[1,128], index: 1, kind: input, shape index: {}]   ;;  %s458_s2 = inlined_call_operand.vmem [shape: f32[1,128], index: 2, kind: input, shape index: {}]   ;;  %s459_s3 = inlined_call_operand.vmem [shape: bf16[128,128], index: 3, kind: input, shape index: {}]   ;;  %s460_s4 = inlined_call_operand.vmem [shape: f32[1,128], index: 4, kind: input, shape index: {}]   ;;  %s461_s5 = inlined_call_operand.vmem [shape: f32[1,128], index: 5, kind: input, shape index: {}]   ;;  %s462_s6 = inlined_call_operand.hbm [shape: bf16[128,128], index: 6, kind: input, shape index: {}]   ;;  %s463_s7 = inlined_call_operand.vmem [shape: f32[16,128], index: 7, kind: output, shape index: {}]  }
   0x1   :  { %s29_s26 = sshll.u32 %s462_s6, 4  ;;  %s31_s28 = sshll.u32 %s362_s27, 4  ;;  %s30_s26 = int_to_ptr.hbm [resolvable:$true] %s29_s26  ;;  %s32_s28 = int_to_ptr.vmem [resolvable:$true] %s31_s28 }
   0x2   :  { %s364_s30 = smov 4  }
   0x3   :  { %37 = dma.hbm_to_vmem [thread:$0]  %s30_s26, 1024, %s32_s28, [#allocation3], %s363_s29, %s363_s29, %s364_s30  }
   0x4   :  { %360 = dma.done.wait [#allocation3], 1024  }
   0x5   :  { %361 = vsyncadd [#allocation3], 4294966272  ;;  %v320_v0 = vld [vmem:[%s459_s3 + $0x38] sm:$0xff]  ;;  %v319_v1 = vld [vmem:[%s459_s3 + $0x30] sm:$0xff] }
   0x6   :  { %129 = vmatpush.bf16.msra.mxu0 %v320_v0  ;;  %v328_v2 = vld [vmem:[#allocation2 + $0x38] sm:$0xff]  ;;  %v318_v3 = vld [vmem:[%s459_s3 + $0x28] sm:$0xff]  ;;  %v327_v4 = vld [vmem:[#allocation2 + $0x30] sm:$0xff] }
   0x7   :  { %228 = vmatpush.bf16.msra.mxu1 %v328_v2  ;;  %v332_v5 = vld [vmem:[%s457_s1] ss:$0 sm:$0xff]  ;;  %v43_v9 = vld [vmem:[%s456_s0 + $0x8] sm:$0xff]  ;;  %v316_v15 = vld [vmem:[%s459_s3 + $0x18] sm:$0xff] }
   0x8   :  { %v333_v6 = vld [vmem:[%s458_s2] ss:$0 sm:$0xff]  ;;  %v326_v10 = vld [vmem:[#allocation2 + $0x28] sm:$0xff]  ;;  %v50_v12 = vsub.f32 %v43_v9, %v332_v5  ;;  %v315_v20 = vld [vmem:[%s459_s3 + $0x10] sm:$0xff] }
   0x9   :  { %v317_v7 = vld [vmem:[%s459_s3 + $0x20] sm:$0xff]  ;;  %v57_v14 = vsub.f32 %v333_v6, %v43_v9  ;;  %v314_v23 = vld [vmem:[%s459_s3 + $0x8] sm:$0xff]  ;;  %v324_v29 = vld [vmem:[#allocation2 + $0x18] sm:$0xff] }
   0xa   :  { %130 = vmatpush.bf16.msra.mxu0 %v319_v1  ;;  %v42_v8 = vld [vmem:[%s456_s0] sm:$0xff]  ;;  %v52_v17 = vmax.f32 %v50_v12, 0.0  ;;  %v323_v30 = vld [vmem:[#allocation2 + $0x10] sm:$0xff]  ;;  %v322_v31 = vld [vmem:[#allocation2 + $0x8] sm:$0xff] }
   0xb   :  { %229 = vmatpush.bf16.msra.mxu1 %v327_v4  ;;  %v49_v11 = vsub.f32 %v42_v8, %v332_v5  ;;  %v56_v13 = vsub.f32 %v333_v6, %v42_v8  ;;  %v59_v19 = vmax.f32 %v57_v14, 0.0  ;;  %v313_v26 = vld [vmem:[%s459_s3] sm:$0xff] }
   0xc   :  { %v325_v28 = vld [vmem:[#allocation2 + $0x20] sm:$0xff] }
   0xd   :  { %v51_v16 = vmax.f32 %v49_v11, 0.0  ;;  %v58_v18 = vmax.f32 %v56_v13, 0.0  ;;  %v61_v22 = vmul.f32 %v59_v19, %v52_v17  ;;  %v321_v32 = vld [vmem:[#allocation2] sm:$0xff] }
   0xe   :  { %131 = vmatpush.bf16.msra.mxu0 %v318_v3  ;;  %v334_v33 = vld [vmem:[%s460_s4] ss:$0 sm:$0xff] }
   0xf   :  { %230 = vmatpush.bf16.msra.mxu1 %v326_v10  ;;  %v60_v21 = vmul.f32 %v58_v18, %v51_v16  ;;  %v63_v25 = vmul.f32 %v61_v22, %v61_v22  ;;  %v335_v34 = vld [vmem:[%s461_s5] ss:$0 sm:$0xff] }
  0x11   :  { %v62_v24 = vmul.f32 %v60_v21, %v60_v21 }
  0x12   :  { %132 = vmatpush.bf16.msra.mxu0 %v317_v7 }
  0x13   :  { %v64_v27 = vpack.c.bf16 %v63_v25, %v62_v24  ;;  %231 = vmatpush.bf16.msra.mxu1 %v325_v28 }
  0x16   :  { %133 = vmatpush.bf16.msra.mxu0 %v316_v15 }
  0x17   :  { %232 = vmatpush.bf16.msra.mxu1 %v324_v29 }
  0x1a   :  { %134 = vmatpush.bf16.msra.mxu0 %v315_v20 }
  0x1b   :  { %233 = vmatpush.bf16.msra.mxu1 %v323_v30 }
  0x1e   :  { %135 = vmatpush.bf16.msra.mxu0 %v314_v23 }
  0x1f   :  { %234 = vmatpush.bf16.msra.mxu1 %v322_v31 }
  0x22   :  { %136 = vmatpush.bf16.msra.mxu0 %v313_v26 }
  0x23   :  { %235 = vmatpush.bf16.msra.mxu1 %v321_v32 }
  0x25   :  { %137 = vmatmul.bf16.vlgmr.msra.gmra.mxu0 %v64_v27 }
  0xa2   :  { %v138_v35 = vpop.f32.mrf.mxu0 }
  0xa3   :  { %v148_v36 = vsub.f32 %v138_v35, %v334_v33  ;;  %v155_v37 = vsub.f32 %v335_v34, %v138_v35 }
  0xa5   :  { %v150_v38 = vmax.f32 %v148_v36, 0.0  ;;  %v157_v39 = vmax.f32 %v155_v37, 0.0 }
  0xa7   :  { %v159_v45 = vmul.f32 %v157_v39, %v150_v38 }
  0xa9   :  { %v161_v47 = vmul.f32 %v159_v45, %v159_v45 }
  0xaa   :  { %v140_v40 = vpop.f32.mrf.mxu0 }
  0xab   :  { %v149_v41 = vsub.f32 %v140_v40, %v334_v33  ;;  %v156_v42 = vsub.f32 %v335_v34, %v140_v40 }
  0xad   :  { %v151_v43 = vmax.f32 %v149_v41, 0.0  ;;  %v158_v44 = vmax.f32 %v156_v42, 0.0 }
  0xaf   :  { %v160_v46 = vmul.f32 %v158_v44, %v151_v43 }
  0xb1   :  { %v162_v48 = vmul.f32 %v160_v46, %v160_v46 }
  0xb3   :  { %v163_v49 = vpack.c.bf16 %v162_v48, %v161_v47 }
  0xb5   :  { %236 = vmatmul.bf16.vlgmr.msra.gmra.mxu1 %v163_v49 }
 0x132   :  { %v237_v50 = vpop.f32.mrf.mxu1 }
 0x133   :  { %242 = vst [vmem:[%s463_s7] sm:$0xff] %v237_v50 }
 0x13a   :  { %v239_v51 = vpop.f32.mrf.mxu1 }
 0x13b   :  { %243 = vst [vmem:[%s463_s7 + $0x8] sm:$0xff] %v239_v51 }
 0x13c   :  { %248 = vsyncpa [#allocation3], 1 }

</bundles_post_ra>
